<compile_context>
chip_gen: v7x
topology: tpu7x:2x2x1
jax: 0.10.0
libtpu: 0.0.40
codegen_flags: <defaults>
</compile_context>

<pallas_src>
import jax
import jax.numpy as jnp
import numpy as np
from jax.experimental import pallas as pl
from jax.experimental.pallas import tpu as pltpu


def _round_up(x, m):
    return ((x + m - 1) // m) * m


def _lane_tile(x, reps):
    """Repeat x `reps` times along the lane (last) axis via lane concats."""
    if reps == 1:
        return x
    if reps & (reps - 1) == 0:                 # power of two: log2(reps) concats
        while reps > 1:
            x = jnp.concatenate([x, x], axis=-1)
            reps //= 2
        return x
    return jnp.concatenate([x] * reps, axis=-1)


def _pos_enc_mlp_kernel(phase_ref, w1_ref, b1_ref, w2_ref, b2_ref, out_ref):
    """sin-only positional encoding + 2-layer ReLU MLP + fused hw repeat."""
    # cos slots already carry a +pi/2 offset in `phase`, so one sin suffices.
    enc = jnp.sin(phase_ref[...])
    # Linear(inp_dim, feat_dim) + ReLU   (MXU matmul, f32 accumulate)
    h = jnp.dot(enc, w1_ref[...], preferred_element_type=jnp.float32) + b1_ref[...]
    h = jnp.maximum(h, 0.0)
    # Linear(feat_dim, feat_dim) + ReLU
    o = jnp.dot(h, w2_ref[...], preferred_element_type=jnp.float32) + b2_ref[...]
    o = jnp.maximum(o, 0.0)
    # Fused `.view(bz,1,feat).repeat(1, hw, 1)`: write a lane-dense
    # (bm, hw*feat_dim) row so the output store / HBM writeback is unmasked.
    reps = out_ref.shape[-1] // o.shape[-1]
    out_ref[...] = _lane_tile(o, reps).astype(out_ref.dtype)


def _build_phase(center_angle, corner_angle, L):
    """Exact element-wise phase build reproducing the PyTorch feature order.

    Feature k is sin(phase[k]); cos slots get a +pi/2 offset (cos x = sin(x+pi/2)).
    Ordering matches torch.stack([sin, cos], dim=-1).reshape(bz, -1) per block,
    center block first, corner block second.
    """
    half_pi = jnp.float32(np.pi / 2)

    def phase_of(angle):
        bz, c = angle.shape
        freqs = 2.0 ** jnp.arange(L, dtype=jnp.float32)                      # (L,)
        ph = freqs[None, :, None] * angle.astype(jnp.float32)[:, None, :]    # (bz, L, c)
        ph = jnp.stack([ph, ph + half_pi], axis=-1)                          # (bz, L, c, 2)
        return ph.reshape(bz, L * c * 2)

    return jnp.concatenate([phase_of(center_angle), phase_of(corner_angle)], axis=1)


def positional_encoding_forward(center_angle, corner_angle, w1, b1, w2, b2,
                                L, patch_size, feat_dim, *, block_bz=256):
    bz = center_angle.shape[0]
    tf_h, tf_w = patch_size
    hw = tf_h * tf_w
    out_cols = hw * feat_dim

    phase = _build_phase(center_angle, corner_angle, L)       # (bz, inp_dim)
    inp_dim = phase.shape[1]

    # Align batch to sublanes (multiple of 8); tile large batches across a
    # parallel grid axis (engages both TensorCores on v7x).
    bm = block_bz if bz > block_bz else _round_up(bz, 8)
    bz_pad = _round_up(bz, bm)
    if bz_pad != bz:
        phase = jnp.pad(phase, ((0, bz_pad - bz), (0, 0)))
    grid = (bz_pad // bm,)

    kernel = pl.pallas_call(
        _pos_enc_mlp_kernel,
        out_shape=jax.ShapeDtypeStruct((bz_pad, out_cols), jnp.float32),
        grid_spec=pltpu.PrefetchScalarGridSpec(
            num_scalar_prefetch=0,
            grid=grid,
            in_specs=[
                pl.BlockSpec((bm, inp_dim), lambda i: (i, 0)),        # phase
                pl.BlockSpec((inp_dim, feat_dim), lambda i: (0, 0)),  # w1
                pl.BlockSpec((1, feat_dim), lambda i: (0, 0)),        # b1
                pl.BlockSpec((feat_dim, feat_dim), lambda i: (0, 0)), # w2
                pl.BlockSpec((1, feat_dim), lambda i: (0, 0)),        # b2
            ],
            out_specs=pl.BlockSpec((bm, out_cols), lambda i: (i, 0)),
        ),
        compiler_params=pltpu.CompilerParams(
            dimension_semantics=("parallel",)),
    )
    out = kernel(phase, w1, b1, w2, b2)                        # (bz_pad, hw*feat)
    # Row-major reshape is free; padded rows are dropped.
    return out[:bz].reshape(bz, hw, feat_dim).astype(jnp.float32)


def _reference(center_angle, corner_angle, w1, b1, w2, b2, L, patch_size,
               feat_dim):
    """Pure-JAX mirror of the PyTorch forward (center+corner_latent)."""
    def pos_enc(angle):
        bz, c = angle.shape
        freqs = 2.0 ** jnp.arange(L, dtype=jnp.float32)
        x = freqs[None, :, None] * angle[:, None, :]             # (bz, L, c)
        return jnp.stack([jnp.sin(x), jnp.cos(x)], axis=-1).reshape(bz, -1)

    enc = jnp.concatenate([pos_enc(center_angle), pos_enc(corner_angle)], axis=1)
    h = jnp.maximum(enc @ w1 + b1, 0.0)
    o = jnp.maximum(h @ w2 + b2, 0.0)
    bz = center_angle.shape[0]
    tf_h, tf_w = patch_size
    return jnp.broadcast_to(o[:, None, :],
                            (bz, tf_h * tf_w, feat_dim)).astype(jnp.float32)


if __name__ == "__main__":
    # Small, forward-consistent shapes:
    #   n_freq_pos_enc L = 4  -> inp_dim = 5 * 4 * L = 80
    #   center_angle (bz, 2) -> 4L feats;  corner_angle (bz, 8) -> 16L feats
    L = 4
    feat_dim = 32
    patch_size = (4, 4)
    bz = 2
    inp_dim = 5 * 4 * L

    key = jax.random.PRNGKey(0)
    k1, k2, k3, k4, k5, k6 = jax.random.split(key, 6)

    center_angle = jax.random.uniform(k1, (bz, 2), jnp.float32,
                                      minval=-np.pi, maxval=np.pi)
    corner_angle = jax.random.uniform(k2, (bz, 8), jnp.float32,
                                      minval=-np.pi, maxval=np.pi)

    # Deterministic synthetic weights (torch Linear.weight.T orientation).
    w1 = jax.random.normal(k3, (inp_dim, feat_dim), jnp.float32) * 0.05
    b1 = jax.random.normal(k4, (1, feat_dim), jnp.float32) * 0.01
    w2 = jax.random.normal(k5, (feat_dim, feat_dim), jnp.float32) * 0.05
    b2 = jax.random.normal(k6, (1, feat_dim), jnp.float32) * 0.01

    out = positional_encoding_forward(center_angle, corner_angle,
                                      w1, b1, w2, b2, L, patch_size, feat_dim)
    out = jax.block_until_ready(out)

    ref = _reference(center_angle, corner_angle, w1, b1, w2, b2, L,
                     patch_size, feat_dim)
    assert out.shape == (bz, patch_size[0] * patch_size[1], feat_dim)
    assert out.dtype == jnp.float32
    np.testing.assert_allclose(np.asarray(out), np.asarray(ref),
                               rtol=1e-5, atol=1e-5)
    print("KERNEL_OK")
</pallas_src>

<mosaic_0001>
module attributes {stable_mosaic.version = 11 : i64} {
  func.func @_pos_enc_mlp_kernel(%arg0: i32, %arg1: memref<8x80xf32, #tpu.memory_space<vmem>>, %arg2: memref<80x32xf32, #tpu.memory_space<vmem>>, %arg3: memref<1x32xf32, #tpu.memory_space<vmem>>, %arg4: memref<32x32xf32, #tpu.memory_space<vmem>>, %arg5: memref<1x32xf32, #tpu.memory_space<vmem>>, %arg6: memref<8x512xf32, #tpu.memory_space<vmem>>) attributes {dimension_semantics = [#tpu.dimension_semantics<parallel>], iteration_bounds = array<i64: 1>, scalar_prefetch = 0 : i64, scratch_operands = 0 : i64, tpu.core_type = #tpu.core_type<tc>, window_params = [{transform_indices = @transform_0, window_bounds = array<i64: 8, 80>}, {pipeline_mode = #tpu.pipeline_mode<synchronous>, transform_indices = @transform_1, window_bounds = array<i64: 80, 32>}, {pipeline_mode = #tpu.pipeline_mode<synchronous>, transform_indices = @transform_2, window_bounds = array<i64: 1, 32>}, {pipeline_mode = #tpu.pipeline_mode<synchronous>, transform_indices = @transform_3, window_bounds = array<i64: 32, 32>}, {pipeline_mode = #tpu.pipeline_mode<synchronous>, transform_indices = @transform_4, window_bounds = array<i64: 1, 32>}, {transform_indices = @transform_5, window_bounds = array<i64: 8, 512>}]} {
    %c0 = arith.constant 0 : index
    %c0_0 = arith.constant 0 : index
    %0 = vector.load %arg1[%c0, %c0_0] : memref<8x80xf32, #tpu.memory_space<vmem>>, vector<8x80xf32>
    %1 = math.sin %0 : vector<8x80xf32>
    %c0_1 = arith.constant 0 : index
    %c0_2 = arith.constant 0 : index
    %2 = vector.load %arg2[%c0_1, %c0_2] : memref<80x32xf32, #tpu.memory_space<vmem>>, vector<80x32xf32>
    %cst = arith.constant dense<0.000000e+00> : vector<8x32xf32>
    %3 = tpu.matmul %1, %2, %cst {dimension_numbers = #tpu.dot_dimension_numbers<[1], [0], [0], [1], [0, 0, 1, 1], [], []>} : vector<8x80xf32>, vector<80x32xf32>, vector<8x32xf32> -> vector<8x32xf32>
    %c0_3 = arith.constant 0 : index
    %c0_4 = arith.constant 0 : index
    %4 = vector.load %arg3[%c0_3, %c0_4] : memref<1x32xf32, #tpu.memory_space<vmem>>, vector<1x32xf32>
    %5 = vector.broadcast %4 : vector<1x32xf32> to vector<8x32xf32>
    %6 = arith.addf %3, %5 : vector<8x32xf32>
    %cst_5 = arith.constant 0.000000e+00 : f32
    %7 = vector.broadcast %cst_5 : f32 to vector<8x32xf32>
    %8 = arith.maximumf %6, %7 : vector<8x32xf32>
    %c0_6 = arith.constant 0 : index
    %c0_7 = arith.constant 0 : index
    %9 = vector.load %arg4[%c0_6, %c0_7] : memref<32x32xf32, #tpu.memory_space<vmem>>, vector<32x32xf32>
    %cst_8 = arith.constant dense<0.000000e+00> : vector<8x32xf32>
    %10 = tpu.matmul %8, %9, %cst_8 {dimension_numbers = #tpu.dot_dimension_numbers<[1], [0], [0], [1], [0, 0, 1, 1], [], []>} : vector<8x32xf32>, vector<32x32xf32>, vector<8x32xf32> -> vector<8x32xf32>
    %c0_9 = arith.constant 0 : index
    %c0_10 = arith.constant 0 : index
    %11 = vector.load %arg5[%c0_9, %c0_10] : memref<1x32xf32, #tpu.memory_space<vmem>>, vector<1x32xf32>
    %12 = vector.broadcast %11 : vector<1x32xf32> to vector<8x32xf32>
    %13 = arith.addf %10, %12 : vector<8x32xf32>
    %cst_11 = arith.constant 0.000000e+00 : f32
    %14 = vector.broadcast %cst_11 : f32 to vector<8x32xf32>
    %15 = arith.maximumf %13, %14 : vector<8x32xf32>
    %16 = tpu.concatenate %15, %15 in 1 : vector<8x32xf32>, vector<8x32xf32> -> vector<8x64xf32>
    %17 = tpu.concatenate %16, %16 in 1 : vector<8x64xf32>, vector<8x64xf32> -> vector<8x128xf32>
    %18 = tpu.concatenate %17, %17 in 1 : vector<8x128xf32>, vector<8x128xf32> -> vector<8x256xf32>
    %19 = tpu.concatenate %18, %18 in 1 : vector<8x256xf32>, vector<8x256xf32> -> vector<8x512xf32>
    %c0_12 = arith.constant 0 : index
    %c0_13 = arith.constant 0 : index
    %20 = vector.load %arg6[%c0_12, %c0_13] : memref<8x512xf32, #tpu.memory_space<vmem>>, vector<8x512xf32>
    tpu.vector_store %arg6[%c0_12, %c0_13], %19 {strides = array<i32>} : memref<8x512xf32, #tpu.memory_space<vmem>>, vector<8x512xf32>,
    return
  }
  func.func @transform_0(%arg0: i32) -> (i32, i32) {
    %c0_i32 = arith.constant 0 : i32
    %c0_i32_0 = arith.constant 0 : i32
    return %arg0, %c0_i32 : i32, i32
  }
  func.func @transform_1(%arg0: i32) -> (i32, i32) {
    %c0_i32 = arith.constant 0 : i32
    %c0_i32_0 = arith.constant 0 : i32
    %c0_i32_1 = arith.constant 0 : i32
    return %c0_i32, %c0_i32_0 : i32, i32
  }
  func.func @transform_2(%arg0: i32) -> (i32, i32) {
    %c0_i32 = arith.constant 0 : i32
    %c0_i32_0 = arith.constant 0 : i32
    %c0_i32_1 = arith.constant 0 : i32
    return %c0_i32, %c0_i32_0 : i32, i32
  }
  func.func @transform_3(%arg0: i32) -> (i32, i32) {
    %c0_i32 = arith.constant 0 : i32
    %c0_i32_0 = arith.constant 0 : i32
    %c0_i32_1 = arith.constant 0 : i32
    return %c0_i32, %c0_i32_0 : i32, i32
  }
  func.func @transform_4(%arg0: i32) -> (i32, i32) {
    %c0_i32 = arith.constant 0 : i32
    %c0_i32_0 = arith.constant 0 : i32
    %c0_i32_1 = arith.constant 0 : i32
    return %c0_i32, %c0_i32_0 : i32, i32
  }
  func.func @transform_5(%arg0: i32) -> (i32, i32) {
    %c0_i32 = arith.constant 0 : i32
    %c0_i32_0 = arith.constant 0 : i32
    return %arg0, %c0_i32 : i32, i32
  }
}

</mosaic_0001>

<bundles_post_ra>
// kernel: tpu_custom_call.1
= control target key start
LH: loop header
LB: loop body
LE: loop exit
PB: predicated region body
PF: predicated region fallthrough
CT: control target
= control target key end

     0   :  { %v456_v3 = vmov 0.0|0.0   ;;  %vm457_vm0 = vmmov 0   ;;  %v458_v6 = vmov 0.0   ;;  %s582_s0 = inlined_call_operand.vmem [shape: f32[8,80], index: 0, kind: input, shape index: {}]   ;;  %s583_s1 = inlined_call_operand.vmem [shape: f32[80,32], index: 1, kind: input, shape index: {}]   ;;  %s584_s2 = inlined_call_operand.vmem [shape: f32[1,32], index: 2, kind: input, shape index: {}]   ;;  %s585_s3 = inlined_call_operand.vmem [shape: f32[32,32], index: 3, kind: input, shape index: {}]   ;;  %s586_s4 = inlined_call_operand.vmem [shape: f32[1,32], index: 4, kind: input, shape index: {}]   ;;  %s587_s5 = inlined_call_operand.hbm [shape: f32[8,512], index: 5, kind: output, shape index: {}]  }
   0x1   :  { %v126_v0 = vld [vmem:[%s583_s1] sm:$0xff]  ;;  %v127_v1 = vld [vmem:[%s583_s1 + $0x8] sm:$0xff]  ;;  %v128_v2 = vld [vmem:[%s583_s1 + $0x10] sm:$0xff]  ;;  %391 = vmatprep.subr.bf16.mxu0 %v456_v3  ;;  %377 = vmatprep.mubr.msk.f32.mxu0 %vm457_vm0, %v458_v6 }
   0x2   :  { %v392_v4 = vpack.c.bf16 %v127_v1, %v126_v0  ;;  %v129_v5 = vld [vmem:[%s583_s1 + $0x18] sm:$0xff]  ;;  %406 = vmatprep.subr.bf16.mxu1 %v456_v3  ;;  %388 = vmatprep.mubr.msk.f32.mxu1 %vm457_vm0, %v458_v6  ;;  %v130_v8 = vld [vmem:[%s583_s1 + $0x20] sm:$0xff]  ;;  %v131_v10 = vld [vmem:[%s583_s1 + $0x28] sm:$0xff] }
   0x3   :  { %v395_v7 = vpack.c.bf16 %v129_v5, %v128_v2  ;;  %v516_v9 = vld [vmem:[%s582_s0] sm:$0xff]  ;;  %v219_v13 = vld [vmem:[%s585_s3 + $0x8] sm:$0xff]  ;;  %v398_v16 = vpack.c.bf16 %v131_v10, %v130_v8 }
   0x4   :  { %393 = vmatpush3.bf16.msra.mxu0 %v392_v4  ;;  %v25_v11 = vand.u32 2139095040, %v516_v9  ;;  %v218_v12 = vld [vmem:[%s585_s3] sm:$0xff]  ;;  %v22_v17 = vand.u32 2147483647, %v516_v9 }
   0x5   :  { %394 = vmatprep.subr.bf16.mxu0 %v456_v3  ;;  %v407_v14 = vpack.c.bf16 %v219_v13, %v218_v12 }
   0x6   :  { %v26_v15 = vshrl.u32 %v25_v11, 23 }
   0x7   :  { %408 = vmatpush3.bf16.msra.mxu1 %v407_v14 }
   0x8   :  { %396 = vmatpush3.bf16.msra.mxu0 %v395_v7 }
   0x9   :  { %10 = vsyncpa [#allocation3], 0  ;;  %397 = vmatprep.subr.bf16.mxu0 %v456_v3  ;;  %v132_v18 = vld [vmem:[%s583_s1 + $0x30] sm:$0xff]  ;;  %v133_v19 = vld [vmem:[%s583_s1 + $0x38] sm:$0xff]  ;;  %v333_v20 = vadd.s32 4294967169, %v26_v15  ;;  %409 = vmatprep.subr.bf16.mxu1 %v456_v3  ;;  %vm24_vm8 = vcmp.lt.s32.totalorder %v516_v9, 0  ;;  %vm114_vm13 = vweird.f32 %v516_v9 }
   0xa   :  { %v401_v22 = vpack.c.bf16 %v133_v19, %v132_v18  ;;  %v29_v23 = vand.u32 8388607, %v22_v17  ;;  %v134_v24 = vld [vmem:[%s583_s1 + $0x40] sm:$0xff]  ;;  %v135_v25 = vld [vmem:[%s583_s1 + $0x48] sm:$0xff]  ;;  %v459_v32 = vmov 683565275  }
   0xb   :  { %v32_v21 = vadd.s32 1, %v333_v20  ;;  %v404_v28 = vpack.c.bf16 %v135_v25, %v134_v24  ;;  %v460_v34 = vmov 2475754826   ;;  %v461_v36 = vmov 2131351028   ;;  %s466_s25 = smov 64  }
   0xc   :  { %399 = vmatpush3.bf16.msra.mxu0 %v398_v16  ;;  %v30_v29 = vor.u32 8388608, %v29_v23  ;;  %v462_v38 = vmov 2102212464   ;;  %v463_v40 = vmov 920167782   ;;  %vm143_vm14 = vcmask 654336  }
   0xd   :  { %400 = vmatprep.subr.bf16.mxu0 %v456_v3  ;;  %vm33_vm1 = vcmp.gt.s32.totalorder %v32_v21, 0  ;;  %v464_v47 = vmov 1326507024   ;;  %vm23_vm9 = vcmp.le.f32.partialorder %v22_v17, 0.7853982  ;;  %vm229_vm15 = vcmask 261120  }
   0xe   :  { %v34_v26 = vsel %vm33_vm1, %v32_v21, 0  ;;  %v70_v49 = vshll.u32 %v30_v29, 8  ;;  %vm313_vm0 = vcmask 523264  }
   0xf   :  { %v36_v27 = vand.u32 31, %v34_v26  ;;  %v35_v30 = vshrl.u32 %v34_v26, 5 }
  0x10   :  { %402 = vmatpush3.bf16.msra.mxu0 %v401_v22 }
  0x11   :  { %403 = vmatprep.subr.bf16.mxu0 %v456_v3  ;;  %v37_v31 = vsub.s32 32, %v36_v27  ;;  %v39_v33 = vshll.u32 %v459_v32, %v36_v27  ;;  %v42_v35 = vshll.u32 %v460_v34, %v36_v27  ;;  %v45_v37 = vshll.u32 %v461_v36, %v36_v27 }
  0x12   :  { %v48_v39 = vshll.u32 %v462_v38, %v36_v27  ;;  %v51_v41 = vshll.u32 %v463_v40, %v36_v27  ;;  %vm54_vm2 = vcmp.lt.s32.totalorder %v35_v30, 1  ;;  %vm57_vm3 = vcmp.lt.s32.totalorder %v35_v30, 4 }
  0x13   :  { %v38_v42 = vshrl.u32 %v459_v32, %v37_v31  ;;  %v40_v43 = vshrl.u32 %v460_v34, %v37_v31  ;;  %v43_v44 = vshrl.u32 %v461_v36, %v37_v31  ;;  %v46_v45 = vshrl.u32 %v462_v38, %v37_v31 }
  0x14   :  { %405 = vmatpush3.bf16.msra.mxu0 %v404_v28  ;;  %v49_v46 = vshrl.u32 %v463_v40, %v37_v31  ;;  %v52_v48 = vshrl.u32 %v464_v47, %v37_v31  ;;  %vm55_vm4 = vcmp.lt.s32.totalorder %v35_v30, 2  ;;  %vm56_vm5 = vcmp.lt.s32.totalorder %v35_v30, 3 }
  0x15   :  { %v41_v50 = vor.u32 %v40_v43, %v39_v33  ;;  %v44_v51 = vor.u32 %v43_v44, %v42_v35  ;;  %v47_v52 = vor.u32 %v46_v45, %v45_v37 }
  0x16   :  { %v50_v53 = vor.u32 %v49_v46, %v48_v39  ;;  %v53_v54 = vor.u32 %v52_v48, %v51_v41 }
  0x17   :  { %v58_v55 = vsel %vm54_vm2, %v38_v42, %v41_v50  ;;  %v59_v56 = vsel %vm57_vm3, %v47_v52, 2102212464  ;;  %v62_v57 = vsel %vm54_vm2, %v41_v50, %v44_v51  ;;  %v66_v58 = vsel %vm54_vm2, %v44_v51, %v47_v52  ;;  %v221_v50 = vld [vmem:[%s585_s3 + $0x18] sm:$0xff] }
  0x18   :  { %v60_v59 = vsel %vm56_vm5, %v44_v51, %v59_v56  ;;  %v63_v60 = vsel %vm57_vm3, %v50_v53, 920167782  ;;  %v67_v61 = vsel %vm57_vm3, %v53_v54, 1326507024  ;;  %v339_v56 = vld [vmem:[%s586_s4] ss:$0 sm:$0xff] }
  0x19   :  { %v64_v62 = vsel %vm56_vm5, %v47_v52, %v63_v60  ;;  %v68_v63 = vsel %vm56_vm5, %v50_v53, %v67_v61  ;;  %v61_v0 = vsel %vm55_vm4, %v58_v55, %v60_v59 }
  0x1a   :  { %v65_v1 = vsel %vm55_vm4, %v62_v57, %v64_v62  ;;  %v69_v2 = vsel %vm55_vm4, %v66_v58, %v68_v63  ;;  %v77_v7 = vmul.u32 %v70_v49, %v61_v0 }
  0x1b   :  { %v543_v3 = vmul.u32.u64.low %v70_v49, %v69_v2  ;;  %v544_v4 = vmul.u32.u64.high %v70_v49, %v69_v2, %v543_v3  ;;  %v546_v5 = vmul.u32.u64.low %v70_v49, %v65_v1  ;;  %v547_v6 = vmul.u32.u64.high %v70_v49, %v65_v1, %v546_v5  ;;  %v220_v49 = vld [vmem:[%s585_s3 + $0x10] sm:$0xff]  ;;  %s465_s3 = smov 32  }
  0x1c   :  { %v410_v51 = vpack.c.bf16 %v221_v50, %v220_v49 }
  0x1d   :  { %vm79_vm6 = vc.u32 %v544_v4, %v546_v5  ;;  %v80_v8 = vadd.s32 1, %v547_v6  ;;  %v78_v21 = vadd.s32 %v546_v5, %v544_v4 }
  0x1e   :  { %411 = vmatpush3.bf16.msra.mxu1 %v410_v51 }
  0x1f   :  { %v81_v10 = vsel %vm79_vm6, %v80_v8, %v547_v6 }
  0x20   :  { %v82_v11 = vadd.s32 %v81_v10, %v77_v7 }
  0x22   :  { %v83_v12 = vadd.s32 536870912, %v82_v11 }
  0x24   :  { %v84_v13 = vshrl.u32 %v83_v12, 30 }
  0x26   :  { %v85_v14 = vshll.u32 %v84_v13, 30  ;;  %v108_v33 = vsub.s32 4, %v84_v13 }
  0x28   :  { %v86_v15 = vsub.s32 %v82_v11, %v85_v14  ;;  %v109_v36 = vsel %vm24_vm8, %v108_v33, %v84_v13 }
  0x29   :  { %v111_v39 = vsel %vm23_vm9, 0, %v109_v36 }
  0x2a   :  { %v88_v16 = vsub.s32 0, %v86_v15  ;;  %v115_v40 = vadd.s32 3, %v111_v39 }
  0x2c   :  { %v334_v18 = vmin.u32 %v88_v16, %v86_v15  ;;  %v116_v41 = vand.u32 3, %v115_v40 }
  0x2e   :  { %v90_v19 = vclz %v334_v18  ;;  %vm121_vm10 = vcmp.eq.s32.totalorder %v116_v41, 2  ;;  %vm118_vm11 = vcmp.eq.s32.totalorder %v116_v41, 0  ;;  %vm117_vm12 = vcmp.lt.s32.totalorder %v116_v41, 2 }
  0x30   :  { %v335_v20 = vadd.s32 4294967294, %v90_v19 }
  0x32   :  { %vm336_vm7 = vcmp.lt.s32.totalorder %v335_v20, 0 }
  0x33   :  { %v93_v22 = vsel %vm336_vm7, 0, %v335_v20 }
  0x34   :  { %v94_v23 = vsub.s32 32, %v93_v22  ;;  %v95_v24 = vshll.u32 %v86_v15, %v93_v22  ;;  %v98_v25 = vsub.s32 4294967266, %v93_v22 }
  0x36   :  { %v96_v26 = vshrl.u32 %v78_v21, %v94_v23  ;;  %v99_v27 = vadd.s32 127, %v98_v25 }
  0x38   :  { %v97_v28 = vor.u32 %v96_v26, %v95_v24  ;;  %v100_v29 = vshll.u32 %v99_v27, 23 }
  0x3a   :  { %v101_v30 = vor.u32 4788187, %v100_v29  ;;  %v104_v31 = vcvt.s32.f32 %v97_v28 }
  0x3c   :  { %v102_v32 = vand.u32 2147483647, %v101_v30 }
  0x3e   :  { %v105_v34 = vmul.f32 %v104_v31, %v102_v32 }
  0x40   :  { %v106_v35 = vxor.u32 2147483648, %v105_v34 }
  0x42   :  { %v107_v37 = vsel %vm24_vm8, %v106_v35, %v105_v34 }
  0x43   :  { %v110_v38 = vsel %vm23_vm9, %v516_v9, %v107_v37  ;;  %v337_v9 = vld [vmem:[%s584_s2] ss:$0 sm:$0xff]  ;;  %s467_s2 = smov [#allocation2]  }
  0x44   :  { %428 = vcosq.f32 %v110_v38  ;;  %s325_s26 = sshll.u32 %s467_s2, 4  ;;  %s326_s26 = int_to_ptr.vmem [resolvable:$true] %s325_s26 }
  0x45   :  { %430 = vsinq.f32 %v110_v38  ;;  %s432_s4 = scalar_lea.vmem %s326_s26, 512  ;;  %p437_p1 = scmp.lt.s32.totalorder %s326_s26, %s326_s26 }
  0x46   :  { %p433_p0 = scmp.ne.s32.totalorder %s326_s26, %s432_s4  ;;  %p438_p2 = scmp.lt.s32.totalorder %s432_s4, %s432_s4 }
  0x48   :  { %p439_p3 = por %p438_p2, %p437_p1 }
  0x4a   :  { %p440_p4 = pnand %p439_p3, %p433_p0 }
  0x4e   :  { %v429_v42 = vpop.eup %428 }
  0x4f   :  { %v431_v43 = vpop.eup %430  ;;  %v122_v44 = vxor.u32 2147483648, %v429_v42 }
  0x50   :  { %v119_v45 = vxor.u32 2147483648, %v431_v43 }
  0x51   :  { %v123_v17 = vsel %vm121_vm10, %v122_v44, %v431_v43 }
  0x52   :  { %v120_v46 = vsel %vm118_vm11, %v429_v42, %v119_v45 }
  0x53   :  { %v124_v47 = vsel %vm117_vm12, %v120_v46, %v123_v17 }
  0x54   :  { %v125_v48 = vsel %vm114_vm13, nan, %v124_v47 }
  0x55   :  { %378 = vmatmul.mubr.msk.f32.vlgmr.msra.gmra.mrb[0].mxu0 %vm143_vm14, %v125_v48 }
 0x128   :  { %v213_v52 = vpop.f32.mrb[0].mxu0 }
 0x129   :  { %v214_v53 = vadd.f32 %v337_v9, %v213_v52  ;;  %v379_v54 = vpop.f32.mrb[1].mxu0 }
 0x12b   :  { %v217_v55 = vmax.f32 %v214_v53, 0.0 }
 0x12d   :  { %389 = vmatmul.mubr.msk.f32.vlgmr.msra.gmra.mrb[0].mxu1 %vm229_vm15, %v217_v55 }
 0x200   :  { %v299_v57 = vpop.f32.mrb[0].mxu1 }
 0x201   :  { %v300_v58 = vadd.f32 %v339_v56, %v299_v57  ;;  %v390_v59 = vpop.f32.mrb[1].mxu1 }
 0x203   :  { %v303_v60 = vmax.f32 %v300_v58, 0.0 }
 0x205   :  { %305 = vrot.lane.b32.xlu0 %v303_v60, %s465_s3 }
 0x277   :  { %v306_v61 = vpop.permute.xlu0 %305 }
 0x278   :  { %v308_v62 = vsel %vm229_vm15, %v303_v60, %v306_v61 }
 0x279   :  { %310 = vrot.lane.b32.xlu0 %v308_v62, %s466_s25 }
 0x2eb   :  { %v311_v63 = vpop.permute.xlu0 %310 }
 0x2ec   :  { %v314_v0 = vsel %vm313_vm0, %v308_v62, %v311_v63 }
 0x2ed   :  { %315 = vst [vmem:[#allocation2] sm:$0xff] %v314_v0  ;;  %316 = vst [vmem:[#allocation2 + $0x8] sm:$0xff] %v314_v0 }
 0x2ee   :  { %317 = vst [vmem:[#allocation2 + $0x10] sm:$0xff] %v314_v0  ;;  %318 = vst [vmem:[#allocation2 + $0x18] sm:$0xff] %v314_v0 }
 0x2ef   :  { %443 = shalt.err (!%p440_p4)
}
 0x2f0   :  { %s444_s29 = scalar_lea.hbm %s587_s5, 512 }
 0x2f1   :  { %p445_p5 = scmp.ne.s32.totalorder %s587_s5, %s444_s29  ;;  %p448_p6 = scmp.lt.u32.totalorder %s444_s29, %s587_s5 }
 0x2f3   :  { %p450_p7 = pnand %p448_p6, %p445_p5 }
 0x2f5   :  { %453 = shalt.err (!%p450_p7)
}
 0x2f6   :  { %328 = dma.vmem_to_hbm [thread:$0]  %s326_s26, 512, %s587_s5, [#allocation3]  }
 0x2f7   :  { %454 = dma.done.wait [#allocation3], 512  }
 0x2f8   :  { %455 = vsyncadd [#allocation3], 4294966784 }
 0x2f9   :  { %332 = vsyncpa [#allocation3], 1 }

</bundles_post_ra>
